<compile_context>
chip_gen: v7x
topology: tpu7x:2x2x1
jax: 0.10.0
libtpu: 0.0.40
codegen_flags: <defaults>
</compile_context>

<pallas_src>
import functools
import math

import jax
import jax.numpy as jnp
from jax import lax
from jax.experimental import pallas as pl
from jax.experimental.pallas import tpu as pltpu


def _qkv_attention_kernel(q_ref, k_ref, v_ref, o_ref, *, length, scale2):
    # q_ref: (1, hb, ch, tq)   k_ref / v_ref: (1, hb, ch, t_pad)   o_ref: (1, hb, ch, tq)
    q = q_ref[0]
    k = k_ref[0]
    v = v_ref[0]
    t_kv = k.shape[-1]

    # Fold both scale factors into q:  (q*s) . (k*s) == (q*s*s) . k
    qs = q * jnp.asarray(scale2, dtype=q.dtype)

    # Transposed scores: wT[h, s, t] = sum_c k[h, c, s] * qs[h, c, t]   (f32 accumulate)
    wT = lax.dot_general(
        k, qs,
        dimension_numbers=(((1,), (1,)), ((0,), (0,))),
        preferred_element_type=jnp.float32,
    )  # [hb, t_kv, tq]

    # Mask padded key positions (static branch: only emitted when T was padded).
    if t_kv != length:
        s_ids = lax.broadcasted_iota(jnp.int32, wT.shape, 1)
        wT = jnp.where(s_ids < length, wT, jnp.float32(-1e30))

    # Softmax over the key axis (axis 1), in float32 like torch.softmax(weight.float()).
    wT = wT - jnp.max(wT, axis=1, keepdims=True)
    wT = jnp.exp(wT)
    inv = pl.reciprocal(jnp.sum(wT, axis=1, keepdims=True), approx=True)
    p = (wT * inv).astype(v.dtype)

    # out[h, c, t] = sum_s v[h, c, s] * p[h, s, t]
    # lhs contracts its last dim, rhs its first non-batch dim -> MXU-canonical,
    # no T x T transpose.
    out = lax.dot_general(
        v, p,
        dimension_numbers=(((2,), (1,)), ((0,), (0,))),
        preferred_element_type=jnp.float32,
    )  # [hb, ch, tq]

    o_ref[0] = out.astype(o_ref.dtype)


def _choose_tiles(n_heads, ch, t_pad, itemsize, budget_bytes=32 * 1024 * 1024):
    """Pick (head-batch, query-tile) so the per-step working set fits a portable VMEM budget."""
    m = t_pad // 128

    def footprint(hb, tq):
        q_o = 2 * 2 * hb * ch * tq * itemsize        # q + out blocks, double-buffered
        k_v = 2 * 2 * hb * ch * t_pad * itemsize     # k + v blocks, double-buffered
        scr = 3 * hb * t_pad * tq * 4                # f32 score temporaries (rough)
        scr += hb * ch * tq * 4                      # f32 output accumulator
        return q_o + k_v + scr

    # Query tiles: multiples of 128 that divide t_pad, at most 512; largest first.
    tq_cands = sorted({128 * d for d in range(1, min(m, 4) + 1) if m % d == 0},
                      reverse=True)
    # Head batches: divisors of n_heads, largest first.
    hb_cands = sorted({h for h in range(1, n_heads + 1) if n_heads % h == 0},
                      reverse=True)
    for tq in tq_cands:
        for hb in hb_cands:
            if footprint(hb, tq) <= budget_bytes:
                return hb, tq
    return 1, 128


def qkv_attention(qkv, n_heads):
    """qkv: [N, 3*H*C, T] -> [N, H*C, T]; same semantics as the PyTorch module."""
    bs, width, length = qkv.shape
    assert width % (3 * n_heads) == 0
    ch = width // (3 * n_heads)
    scale2 = 1.0 / math.sqrt(ch)          # (1 / ch**0.25) ** 2, folded into q

    # Pad the sequence axis to a lane-dense multiple of 128.
    t_pad = ((length + 127) // 128) * 128
    x = qkv if t_pad == length else jnp.pad(qkv, ((0, 0), (0, 0), (0, t_pad - length)))
    # Free reshape: channel axis -> (3*H, C).  No sliced copies of qkv are made.
    x = x.reshape(bs, 3 * n_heads, ch, t_pad)

    itemsize = jnp.dtype(qkv.dtype).itemsize
    hb, tq = _choose_tiles(n_heads, ch, t_pad, itemsize)
    n_groups = n_heads // hb
    n_qtiles = t_pad // tq

    kernel = functools.partial(_qkv_attention_kernel, length=length, scale2=scale2)

    q_spec = pl.BlockSpec((1, hb, ch, tq), lambda n, g, t: (n, g, 0, t))
    k_spec = pl.BlockSpec((1, hb, ch, t_pad), lambda n, g, t: (n, n_groups + g, 0, 0))
    v_spec = pl.BlockSpec((1, hb, ch, t_pad), lambda n, g, t: (n, 2 * n_groups + g, 0, 0))
    o_spec = pl.BlockSpec((1, hb, ch, tq), lambda n, g, t: (n, g, 0, t))

    out = pl.pallas_call(
        kernel,
        out_shape=jax.ShapeDtypeStruct((bs, n_heads, ch, t_pad), qkv.dtype),
        grid_spec=pltpu.PrefetchScalarGridSpec(
            num_scalar_prefetch=0,
            grid=(bs, n_groups, n_qtiles),
            in_specs=[q_spec, k_spec, v_spec],
            out_specs=o_spec,
        ),
        compiler_params=pltpu.CompilerParams(
            dimension_semantics=("parallel", "parallel", "arbitrary"),
            vmem_limit_bytes=64 * 1024 * 1024,
        ),
    )(x, x, x)

    out = out.reshape(bs, n_heads * ch, t_pad)
    if t_pad != length:
        out = out[:, :, :length]
    return out


def _qkv_attention_ref(qkv, n_heads):
    """Pure-JAX reference mirroring the PyTorch forward exactly."""
    bs, width, length = qkv.shape
    ch = width // (3 * n_heads)
    hc = n_heads * ch
    q = qkv[:, 0 * hc:1 * hc, :].reshape(bs * n_heads, ch, length)
    k = qkv[:, 1 * hc:2 * hc, :].reshape(bs * n_heads, ch, length)
    v = qkv[:, 2 * hc:3 * hc, :].reshape(bs * n_heads, ch, length)
    scale = 1.0 / math.sqrt(math.sqrt(ch))
    w = jnp.einsum("bct,bcs->bts", q * scale, k * scale)
    w = jax.nn.softmax(w.astype(jnp.float32), axis=-1).astype(w.dtype)
    a = jnp.einsum("bts,bcs->bct", w, v)
    return a.reshape(bs, -1, length)


if __name__ == "__main__":
    # Module has no learnable parameters; only n_heads is a hyperparameter.
    n_heads = 2
    bs, ch, T = 2, 8, 16
    width = 3 * n_heads * ch  # 48

    key = jax.random.PRNGKey(0)
    qkv = jax.random.normal(key, (bs, width, T), dtype=jnp.float32)

    out = qkv_attention(qkv, n_heads)
    out = jax.block_until_ready(out)

    ref = _qkv_attention_ref(qkv, n_heads)
    assert out.shape == (bs, n_heads * ch, T)
    # Tolerance loosened slightly vs f32-exact: approx (EUP) reciprocal in the softmax.
    assert jnp.allclose(out, ref, atol=5e-3, rtol=5e-3), "mismatch vs reference"

    print("KERNEL_OK")
</pallas_src>

<mosaic_0001>
module attributes {stable_mosaic.version = 11 : i64} {
  func.func @_qkv_attention_kernel(%arg0: i32, %arg1: i32, %arg2: i32, %arg3: memref<1x2x8x128xf32, #tpu.memory_space<vmem>>, %arg4: memref<1x2x8x128xf32, #tpu.memory_space<vmem>>, %arg5: memref<1x2x8x128xf32, #tpu.memory_space<vmem>>, %arg6: memref<1x2x8x128xf32, #tpu.memory_space<vmem>>) attributes {dimension_semantics = [#tpu.dimension_semantics<parallel>, #tpu.dimension_semantics<parallel>, #tpu.dimension_semantics<arbitrary>], iteration_bounds = array<i64: 2, 1, 1>, scalar_prefetch = 0 : i64, scratch_operands = 0 : i64, tpu.core_type = #tpu.core_type<tc>, window_params = [{transform_indices = @transform_0, window_bounds = array<i64: 1, 2, 8, 128>}, {transform_indices = @transform_1, window_bounds = array<i64: 1, 2, 8, 128>}, {transform_indices = @transform_2, window_bounds = array<i64: 1, 2, 8, 128>}, {transform_indices = @transform_3, window_bounds = array<i64: 1, 2, 8, 128>}]} {
    %c0 = arith.constant 0 : index
    %c0_0 = arith.constant 0 : index
    %c0_1 = arith.constant 0 : index
    %c0_2 = arith.constant 0 : index
    %0 = vector.load %arg3[%c0, %c0_0, %c0_1, %c0_2] : memref<1x2x8x128xf32, #tpu.memory_space<vmem>>, vector<1x2x8x128xf32>
    %1 = vector.shape_cast %0 : vector<1x2x8x128xf32> to vector<2x8x128xf32>
    %c0_3 = arith.constant 0 : index
    %c0_4 = arith.constant 0 : index
    %c0_5 = arith.constant 0 : index
    %c0_6 = arith.constant 0 : index
    %2 = vector.load %arg4[%c0_3, %c0_4, %c0_5, %c0_6] : memref<1x2x8x128xf32, #tpu.memory_space<vmem>>, vector<1x2x8x128xf32>
    %3 = vector.shape_cast %2 : vector<1x2x8x128xf32> to vector<2x8x128xf32>
    %c0_7 = arith.constant 0 : index
    %c0_8 = arith.constant 0 : index
    %c0_9 = arith.constant 0 : index
    %c0_10 = arith.constant 0 : index
    %4 = vector.load %arg5[%c0_7, %c0_8, %c0_9, %c0_10] : memref<1x2x8x128xf32, #tpu.memory_space<vmem>>, vector<1x2x8x128xf32>
    %5 = vector.shape_cast %4 : vector<1x2x8x128xf32> to vector<2x8x128xf32>
    %cst = arith.constant 0.353553385 : f32
    %6 = vector.broadcast %cst : f32 to vector<2x8x128xf32>
    %7 = arith.mulf %1, %6 : vector<2x8x128xf32>
    %cst_11 = arith.constant dense<0.000000e+00> : vector<2x128x128xf32>
    %8 = tpu.matmul %3, %7, %cst_11 {dimension_numbers = #tpu.dot_dimension_numbers<[1], [1], [2], [2], [0, 0, 0, 2, 1, 2], [0], [0]>} : vector<2x8x128xf32>, vector<2x8x128xf32>, vector<2x128x128xf32> -> vector<2x128x128xf32>
    %9 = tpu.iota {dimensions = array<i32: 1>} : vector<2x128x128xi32>
    %c16_i32 = arith.constant 16 : i32
    %10 = vector.broadcast %c16_i32 : i32 to vector<2x128x128xi32>
    %11 = arith.cmpi slt, %9, %10 : vector<2x128x128xi32>
    %cst_12 = arith.constant -1.000000e+30 : f32
    %12 = vector.broadcast %cst_12 : f32 to vector<2x128x128xf32>
    %13 = arith.select %11, %8, %12 : vector<2x128x128xi1>, vector<2x128x128xf32>
    %cst_13 = arith.constant dense<0xFF800000> : vector<2x128xf32>
    %14 = vector.multi_reduction <maximumf>, %13, %cst_13 [1] : vector<2x128x128xf32> to vector<2x128xf32>
    %15 = vector.shape_cast %14 : vector<2x128xf32> to vector<2x1x128xf32>
    %16 = vector.broadcast %15 : vector<2x1x128xf32> to vector<2x128x128xf32>
    %17 = arith.subf %13, %16 : vector<2x128x128xf32>
    %18 = math.exp %17 : vector<2x128x128xf32>
    %cst_14 = arith.constant dense<0.000000e+00> : vector<2x128xf32>
    %19 = vector.multi_reduction <add>, %18, %cst_14 [1] : vector<2x128x128xf32> to vector<2x128xf32>
    %20 = vector.shape_cast %19 : vector<2x128xf32> to vector<2x1x128xf32>
    %21 = tpu.reciprocal %20 {approx = true} : vector<2x1x128xf32> -> vector<2x1x128xf32>
    %22 = vector.broadcast %21 : vector<2x1x128xf32> to vector<2x128x128xf32>
    %23 = arith.mulf %18, %22 : vector<2x128x128xf32>
    %cst_15 = arith.constant dense<0.000000e+00> : vector<2x8x128xf32>
    %24 = tpu.matmul %5, %23, %cst_15 {dimension_numbers = #tpu.dot_dimension_numbers<[2], [1], [1], [2], [0, 0, 0, 1, 1, 2], [0], [0]>} : vector<2x8x128xf32>, vector<2x128x128xf32>, vector<2x8x128xf32> -> vector<2x8x128xf32>
    %c0_16 = arith.constant 0 : index
    %c0_17 = arith.constant 0 : index
    %c0_18 = arith.constant 0 : index
    %c0_19 = arith.constant 0 : index
    %25 = vector.load %arg6[%c0_16, %c0_17, %c0_18, %c0_19] : memref<1x2x8x128xf32, #tpu.memory_space<vmem>>, vector<1x2x8x128xf32>
    %26 = vector.shape_cast %25 : vector<1x2x8x128xf32> to vector<2x8x128xf32>
    %27 = vector.shape_cast %24 : vector<2x8x128xf32> to vector<1x2x8x128xf32>
    tpu.vector_store %arg6[%c0_16, %c0_17, %c0_18, %c0_19], %27 {strides = array<i32>} : memref<1x2x8x128xf32, #tpu.memory_space<vmem>>, vector<1x2x8x128xf32>,
    return
  }
  func.func @transform_0(%arg0: i32, %arg1: i32, %arg2: i32) -> (i32, i32, i32, i32) {
    %c0_i32 = arith.constant 0 : i32
    %c0_i32_0 = arith.constant 0 : i32
    return %arg0, %arg1, %c0_i32, %arg2 : i32, i32, i32, i32
  }
  func.func @transform_1(%arg0: i32, %arg1: i32, %arg2: i32) -> (i32, i32, i32, i32) {
    %c1_i32 = arith.constant 1 : i32
    %0 = arith.addi %c1_i32, %arg1 : i32
    %c0_i32 = arith.constant 0 : i32
    %c0_i32_0 = arith.constant 0 : i32
    %c0_i32_1 = arith.constant 0 : i32
    return %arg0, %0, %c0_i32, %c0_i32_0 : i32, i32, i32, i32
  }
  func.func @transform_2(%arg0: i32, %arg1: i32, %arg2: i32) -> (i32, i32, i32, i32) {
    %c2_i32 = arith.constant 2 : i32
    %0 = arith.addi %c2_i32, %arg1 : i32
    %c0_i32 = arith.constant 0 : i32
    %c0_i32_0 = arith.constant 0 : i32
    %c0_i32_1 = arith.constant 0 : i32
    return %arg0, %0, %c0_i32, %c0_i32_0 : i32, i32, i32, i32
  }
  func.func @transform_3(%arg0: i32, %arg1: i32, %arg2: i32) -> (i32, i32, i32, i32) {
    %c0_i32 = arith.constant 0 : i32
    %c0_i32_0 = arith.constant 0 : i32
    return %arg0, %arg1, %c0_i32, %arg2 : i32, i32, i32, i32
  }
}

</mosaic_0001>

<bundles_post_ra>
// kernel: tpu_custom_call.1
= control target key start
LH: loop header
LB: loop body
LE: loop exit
PB: predicated region body
PF: predicated region fallthrough
CT: control target
= control target key end

     0   :  { %s2311_s0 = inlined_call_operand.hbm [shape: f32[2,6,8,128], index: 0, kind: input, shape index: {}]   ;;  %s2312_s1 = inlined_call_operand.hbm [shape: f32[2,6,8,128], index: 1, kind: input, shape index: {}]   ;;  %s2313_s2 = inlined_call_operand.hbm [shape: f32[2,6,8,128], index: 2, kind: input, shape index: {}]   ;;  %s2314_s3 = inlined_call_operand.hbm [shape: f32[2,2,8,128], index: 3, kind: output, shape index: {}]  }
   0x1   :  { %2324 = sst [smem:[#allocation14_spill]] %s2311_s0 }
   0x2   :  { %2325 = sst [smem:[#allocation15_spill]] %s2312_s1 }
   0x3   :  { %8 = vsyncpa [#allocation3], 0 }
   0x4   :  { %10 = vsyncpa [#allocation3 + $0x1], 0 }
   0x5   :  { %11 = vsyncpa [#allocation6], 0 }
   0x6   :  { %13 = vsyncpa [#allocation6 + $0x1], 0 }
   0x7   :  { %14 = vsyncpa [#allocation4], 0 }
   0x8   :  { %16 = vsyncpa [#allocation4 + $0x1], 0  ;;  %s1954_s12 = smov 0   ;;  %s1956_s13 = smov 0  }
   0x9   :  { %s1958_s14 = smov 0   ;;  %s1960_s15 = smov 0  }
   0xa   :  { %s1962_s16 = smov 0   ;;  %s1964_s17 = smov 0  }
   0xb LB: > { %2326 = sst [smem:[#allocation12_spill]] %s1917_s16  ;;  %s1985_s18 = sadd.s32 4294967295, %s1921_s17   ;;  %s1921_s17 = sphi %s1964_s17, %s22_s17   ;;  %s1917_s16 = sphi %s1962_s16, %s2347_s16   ;;  %s1913_s15 = sphi %s1960_s15, %s2346_s15   ;;  %s1909_s14 = sphi %s1958_s14, %s2350_s14   ;;  %s1905_s13 = sphi %s1956_s13, %s2349_s13   ;;  %s1901_s12 = sphi %s1954_s12, %s2348_s12  }
   0xc   : > { %s1357_s19 = sadd.s32 4294967294, %s1921_s17   ;;  %s41_s20 = sadd.s32 1, %s1917_s16 }
   0xd   : > { %s52_s21 = sadd.s32 1, %s1909_s14  ;;  %p43_p0 = scmp.ge.s32.totalorder %s41_s20, 2 }
   0xe   : > { %p59_p1 = scmp.ne.s32.totalorder %s1909_s14, %s1905_s13  ;;  %p60_p2 = scmp.eq.s32.totalorder %s1921_s17, 0 }
   0xf   : > { %p65_p3 = scmp.ne.s32.totalorder %s1905_s13, %s1901_s12  ;;  %s2352_s20 = smov (%p43_p0, %s41_s20), 0 }
  0x10   : > { %2327 = sst [smem:[#allocation13_spill]] %s2352_s20  ;;  %p1997_p4 = por %p60_p2, %p59_p1 }
  0x11   : > { %p66_p5 = scmp.eq.s32.totalorder %s1985_s18, 0  ;;  %s45_s23 = ssub.s32 %s1917_s16, %s2352_s20 }
  0x12   : > { %p153_p6 = scmp.eq.s32.totalorder %s1985_s18, 1  ;;  %p50_p7 = scmp.eq.s32.totalorder %s45_s23, 0 }
  0x13   : > { %p2005_p8 = por %p66_p5, %p65_p3  ;;  %p159_p10 = scmp.eq.s32.totalorder %s1357_s19, 1 }
  0x14   : > { %p2009_p9 = por %p153_p6, %p59_p1  ;;  %p1670_p13 = scmp.lt.s32.totalorder %s1921_s17, 2 }
  0x15   : > { %s2329_s24 = scalar_select %p2005_p8, 1, 0 }
  0x16   : > { %s2330_s25 = scalar_select %p2009_p9, 1, 0 }
  0x17   : > { %s2014_s26 = scalar_select %p50_p7, %s1909_s14, %s52_s21  }
  0x18   : > { %p2016_p11 = por %p159_p10, %p65_p3  ;;  %s2315_s28 = sand.u32 1, %s1909_s14  }
  0x19   : > { %s2025_s29 = sshll.u32 %s2315_s28, 4  ;;  %s2028_s30 = smul.u32 768, %s1917_s16 }
  0x1a   : > { %s2331_s27 = scalar_select %p2016_p11, 1, 0 }
  0x1b   : > { %p2032_p0 = pnand %p1670_p13, %p1997_p4  ;;  %s203_s5 = sand.u32 1, %s1921_s17  }
  0x1c   : > { %s2333_s1 = sld [smem:[#allocation15_spill]]  ;;  %s207_s10 = scalar_lea.vmem [#allocation5], %s2025_s29 }
  0x1d   : > { %s217_s11 = sshll.u32 %s207_s10, 4  ;;  %s2047_s19 = scalar_lea.sflag [#allocation6], %s203_s5  ;;  %s2044_s11 = int_to_ptr.vmem [resolvable:$true] %s217_s11 }
  0x1e   : > { %p2052_p3 = pneg %p2032_p0 }
  0x22   : > { %s1259_s8 = scalar_lea.hbm %s2333_s1, %s2028_s30  ;;  %s1748_s7 = scalar_lea.hbm %s2333_s1, 1536 }
  0x23   : > { %s2041_s9 = scalar_lea.hbm %s1259_s8, 256  ;;  %s1773_s21 = scalar_lea.hbm %s1259_s8, 512 }
  0x24   : > { %p1744_p2 = scmp.ne.s32.totalorder %s2041_s9, %s1773_s21  ;;  %p1749_p6 = scmp.lt.u32.totalorder %s2041_s9, %s2333_s1 }
  0x25   : > { %p1750_p7 = scmp.lt.u32.totalorder %s1748_s7, %s1773_s21  ;;  %p1752_p13 = scmp.lt.u32.totalorder %s1773_s21, %s2041_s9 }
  0x26   : > { %p1746_p4 = pnand %p2052_p3, %p1744_p2 }
  0x27   : > { %p1751_p10 = por %p1750_p7, %p1749_p6 }
  0x28   : > { %p1747_p5 = pneg %p1746_p4 }
  0x29   : > { %p1753_p12 = por %p1752_p13, %p1751_p10 }
  0x2b   : > { %p1754_p1 = pnand %p1753_p12, %p1747_p5 }
  0x2d   : > { %1757 = shalt.err (!%p1754_p1)
}
  0x2e   : > { %s1758_s5 = scalar_lea.vmem %s2044_s11, 256  ;;  %s1923_s8 = smov [#allocation5]  }
  0x2f   : > { %p1759_p2 = scmp.ne.s32.totalorder %s2044_s11, %s1758_s5  ;;  %s1763_s23 = sshll.u32 %s1923_s8, 4  ;;  %s1764_s23 = int_to_ptr.vmem [resolvable:$false] %s1763_s23 }
  0x30   : > { %s1765_s28 = scalar_lea.vmem %s1764_s23, 512  ;;  %p1766_p9 = scmp.lt.s32.totalorder %s2044_s11, %s1764_s23 }
  0x31   : > { %p1761_p4 = pnand %p1759_p2, %p2052_p3  ;;  %p1767_p8 = scmp.lt.s32.totalorder %s1765_s28, %s1758_s5 }
  0x33   : > { %p1762_p11 = pneg %p1761_p4  ;;  %p1768_p6 = por %p1767_p8, %p1766_p9 }
  0x35   : > { %p1769_p7 = pnand %p1768_p6, %p1762_p11 }
  0x37   : > { %1772 = shalt.err (!%p1769_p7)
}
  0x38   : > { %s2318_s21 = smov 128   ;;  %s2320_s6 = smov 8  }
  0x39   : > { %1662 = dma.hbm_to_vmem [thread:$0]  (!%p2032_p0), %s2041_s9, 256, %s2044_s11, %s2047_s19, %s2318_s21, %s2318_s21, %s2320_s6  }
  0x3a   : > { %p249_p8 = scmp.lt.s32.totalorder %s1921_s17, 3  ;;  %p2335_p9 = scmp.ge.s32.totalorder %s1921_s17, 1 }
  0x3b   : > { %s2337_s0 = sld [smem:[#allocation14_spill]]  ;;  %s183_s23 = scalar_lea.vmem [#allocation2], %s2025_s29 }
  0x3c   : > { %p2082_p11 = pnand %p2335_p9, %p249_p8  ;;  %s193_s28 = sshll.u32 %s183_s23, 4  ;;  %s2093_s28 = int_to_ptr.vmem [resolvable:$true] %s193_s28 }
  0x3d   : > { %s2338_s9 = sand.u32 1, %s1909_s14  }
  0x3e   : > { %s2336_s7 = scalar_select %p2082_p11, 1, 0 }
  0x3f   : > { %s2097_s11 = scalar_lea.sflag [#allocation3], %s2338_s9 }
  0x41   : > { %s2090_s8 = scalar_lea.hbm %s2337_s0, %s2028_s30  ;;  %s1779_s5 = scalar_lea.hbm %s2337_s0, 1536 }
  0x42   : > { %s1774_s21 = scalar_lea.hbm %s2090_s8, 256  ;;  %p1780_p10 = scmp.lt.u32.totalorder %s2090_s8, %s2337_s0 }
  0x43   : > { %p1775_p12 = scmp.ne.s32.totalorder %s2090_s8, %s1774_s21  ;;  %p1781_p13 = scmp.lt.u32.totalorder %s1779_s5, %s1774_s21 }
  0x44   : > { %p1783_p4 = scmp.lt.u32.totalorder %s1774_s21, %s2090_s8 }
  0x45   : > { %p1777_p1 = pnand %p1775_p12, %p2052_p3  ;;  %p1782_p2 = por %p1781_p13, %p1780_p10 }
  0x47   : > { %p1778_p5 = pneg %p1777_p1  ;;  %p1784_p6 = por %p1783_p4, %p1782_p2 }
  0x49   : > { %p1785_p7 = pnand %p1784_p6, %p1778_p5 }
  0x4b   : > { %1788 = shalt.err (!%p1785_p7)
}
  0x4c   : > { %s1789_s23 = scalar_lea.vmem %s2093_s28, 256  ;;  %s1926_s6 = smov [#allocation2]  }
  0x4d   : > { %p1790_p8 = scmp.ne.s32.totalorder %s2093_s28, %s1789_s23  ;;  %s1794_s9 = sshll.u32 %s1926_s6, 4  ;;  %s1795_s9 = int_to_ptr.vmem [resolvable:$false] %s1794_s9 }
  0x4e   : > { %s1796_s1 = scalar_lea.vmem %s1795_s9, 512  ;;  %p1797_p1 = scmp.lt.s32.totalorder %s2093_s28, %s1795_s9 }
  0x4f   : > { %p1792_p9 = pnand %p1790_p8, %p2052_p3  ;;  %p1798_p11 = scmp.lt.s32.totalorder %s1796_s1, %s1789_s23 }
  0x51   : > { %p1793_p12 = pneg %p1792_p9  ;;  %p1799_p10 = por %p1798_p11, %p1797_p1 }
  0x53   : > { %p1800_p13 = pnand %p1799_p10, %p1793_p12 }
  0x55   : > { %1803 = shalt.err (!%p1800_p13)
}
  0x56   : > { %s2339_s20 = smov 8   ;;  %s2340_s21 = smov 128  }
  0x57   : > { %1659 = dma.hbm_to_vmem [thread:$0]  (!%p2032_p0), %s2090_s8, 256, %s2093_s28, %s2097_s11, %s2340_s21, %s2340_s21, %s2339_s20  }
  0x58   : > { %s1268_s6 = scalar_lea.hbm %s2313_s2, %s2028_s30  ;;  %s231_s23 = scalar_lea.vmem [#allocation7], %s2025_s29 }
  0x59   : > { %s241_s9 = sshll.u32 %s231_s23, 4  ;;  %s2129_s1 = scalar_lea.hbm %s1268_s6, 512  ;;  %s2131_s9 = int_to_ptr.vmem [resolvable:$true] %s241_s9 }
  0x5a   : > { %s1834_s0 = scalar_lea.hbm %s1268_s6, 768  ;;  %s1809_s28 = scalar_lea.hbm %s2313_s2, 1536 }
  0x5b   : > { %p1805_p11 = scmp.ne.s32.totalorder %s2129_s1, %s1834_s0  ;;  %p1810_p4 = scmp.lt.u32.totalorder %s2129_s1, %s2313_s2 }
  0x5c   : > { %p1811_p6 = scmp.lt.u32.totalorder %s1809_s28, %s1834_s0  ;;  %p1813_p8 = scmp.lt.u32.totalorder %s1834_s0, %s2129_s1 }
  0x5d   : > { %p1807_p5 = pnand %p1805_p11, %p2052_p3 }
  0x5e   : > { %p1812_p7 = por %p1811_p6, %p1810_p4 }
  0x5f   : > { %p1808_p2 = pneg %p1807_p5 }
  0x60   : > { %p1814_p9 = por %p1813_p8, %p1812_p7 }
  0x62   : > { %p1815_p12 = pnand %p1814_p9, %p1808_p2 }
  0x64   : > { %1818 = shalt.err (!%p1815_p12)
}
  0x65   : > { %s1819_s29 = scalar_lea.vmem %s2131_s9, 256  ;;  %s1927_s16 = smov [#allocation7]  }
  0x66   : > { %p1820_p1 = scmp.ne.s32.totalorder %s2131_s9, %s1819_s29  ;;  %s1824_s10 = sshll.u32 %s1927_s16, 4  ;;  %s1825_s10 = int_to_ptr.vmem [resolvable:$false] %s1824_s10 }
  0x67   : > { %s1826_s5 = scalar_lea.vmem %s1825_s10, 512  ;;  %p1827_p11 = scmp.lt.s32.totalorder %s2131_s9, %s1825_s10 }
  0x68   : > { %p1822_p10 = pnand %p1820_p1, %p2052_p3  ;;  %p1828_p5 = scmp.lt.s32.totalorder %s1826_s5, %s1819_s29 }
  0x6a   : > { %p1823_p13 = pneg %p1822_p10  ;;  %p1829_p4 = por %p1828_p5, %p1827_p11 }
  0x6c   : > { %p1830_p6 = pnand %p1829_p4, %p1823_p13 }
  0x6e   : > { %1833 = shalt.err (!%p1830_p6)
}
  0x6f   : > { %1665 = dma.hbm_to_vmem [thread:$0]  (!%p2032_p0), %s2129_s1, 256, %s2131_s9, %s2047_s19, %s2340_s21, %s2340_s21, %s2339_s20  }
  0x70   : > { %p2341_p3 = scmp.ne.s32.totalorder %s2336_s7, 0 }
  0x71   : > { %s2160_s0 = sand.u32 (!%p2341_p3), 1, %s1905_s13   ;;  %p2342_p2 = scmp.ne.s32.totalorder (!%p2341_p3), %s2329_s24, 0 }
  0x72   : > { %253 = sbr.rel (%p2341_p3) target bundleno = 895 (0x37f), region = 32  ;;  %s2163_s22 = sshll.u32 (!%p2341_p3), %s2160_s0, 4 }
  0x73   : > { %s256_s4 = scalar_lea.sflag (!%p2341_p3), [#allocation3], %s2160_s0  ;;  %s259_s6 = scalar_lea.vmem (!%p2341_p3), [#allocation2], %s2163_s22 }
  0x79   : > { %1888 = dma.done.wait (%p2342_p2), %s256_s4, 256  }
  0x7a   : > { %1890 = vsyncadd (%p2342_p2), %s256_s4, 4294967040  ;;  %s264_s19 = sand.u32 1, %s1985_s18   ;;  %s268_s20 = scalar_lea.vmem [#allocation5], %s2163_s22 }
  0x7b   : > { %s265_s7 = scalar_lea.sflag [#allocation6], %s264_s19 }
  0x7c   : > { %1892 = dma.done.wait (%p2342_p2), %s265_s7, 512  }
  0x7d   : > { %1894 = vsyncadd (%p2342_p2), %s265_s7, 4294966784  ;;  %v318_v0 = vld [vmem:[%s268_s20] sm:$0xff]  ;;  %v319_v3 = vld [vmem:[%s268_s20 + $0x8] sm:$0xff]  ;;  %vm356_vm0 = vcmask 64512   ;;  %v1928_v24 = vmov 0.0|0.0   ;;  %vm1929_vm1 = vmmov 0  }
  0x7e   : > { %324 = vxpose.xlu0.b32.start.end [1/1] (short) %v318_v0, 128  ;;  %v316_v1 = vld [vmem:[%s259_s6] sm:$0xff]  ;;  %v317_v4 = vld [vmem:[%s259_s6 + $0x8] sm:$0xff]  ;;  %s277_s18 = scalar_lea.vmem [#allocation7], %s2163_s22  ;;  %s309_s24 = scalar_lea.vmem [#allocation8], %s2163_s22 }
  0x7f   : > { %v322_v2 = vmul.f32 0.35355338, %v316_v1  ;;  %v323_v5 = vmul.f32 0.35355338, %v317_v4  ;;  %s1213_s21 = sshll.u32 %s309_s24, 4  ;;  %s1408_s23 = sshll.u32 %s1913_s15, 8  ;;  %s2257_s21 = int_to_ptr.vmem [resolvable:$true] %s1213_s21 }
  0x80   : > { %s2262_s8 = scalar_lea.hbm %s2314_s3, %s1408_s23  ;;  %s1197_s28 = scalar_lea.sflag [#allocation4], %s2160_s0 }
  0x81   : > { %1477 = vmatprep.subr.mxu0 %v322_v2  ;;  %1503 = vmatprep.subr.mxu1 %v323_v5  ;;  %s1835_s11 = scalar_lea.vmem %s2257_s21, 256  ;;  %p2343_p7 = scmp.ne.s32.totalorder %s2330_s25, 0 }
  0x82   : > { %1478 = vmatpush3.msra.mxu0 %v322_v2  ;;  %1504 = vmatpush3.msra.mxu1 %v323_v5  ;;  %p1836_p0 = scmp.ne.s32.totalorder %s2257_s21, %s1835_s11  ;;  %s1931_s15 = smov [#allocation8]  }
  0x83   : > { %1599 = vmatprep.subr.bf16.mxu0 %v1928_v24  ;;  %1623 = vmatprep.subr.bf16.mxu1 %v1928_v24  ;;  %s1839_s30 = sshll.u32 %s1931_s15, 4  ;;  %s1840_s30 = int_to_ptr.vmem [resolvable:$false] %s1839_s30 }
  0x84   : > { %p1837_p8 = pnand %p1836_p0, %p2343_p7  ;;  %s1841_s29 = scalar_lea.vmem %s1840_s30, 512 }
  0x85   : > { %p1842_p12 = scmp.lt.s32.totalorder %s2257_s21, %s1840_s30  ;;  %p1843_p1 = scmp.lt.s32.totalorder %s1841_s29, %s1835_s11 }
  0x86   : > { %p1838_p9 = pneg %p1837_p8 }
  0x87   : > { %p1844_p10 = por %p1843_p1, %p1842_p12 }
  0x89   : > { %p1845_p13 = pnand %p1844_p10, %p1838_p9 }
  0xbb   : > { %550 = vxpose.xlu0.b32.start.end [1/1] (short) %v319_v3, 128 }
  0xfe   : > { %v340_v6 = vpop.trf.xlu0 }
  0xff   : > { %1479 = vmatprep.mubr.msk.f32.mxu0 %vm356_vm0, %v340_v6 }
 0x102   : > { %v341_v7 = vpop.trf.xlu0 }
 0x103   : > { %1480 = vmatmul.mubr.msk.f32.vlgmr.msra.gmra.mrb[0].mxu0 %vm356_vm0, %v341_v7 }
 0x106   : > { %v342_v8 = vpop.trf.xlu0 }
 0x107   : > { %1482 = vmatprep.mubr.msk.f32.mxu0 %vm356_vm0, %v342_v8 }
 0x10a   : > { %v343_v9 = vpop.trf.xlu0 }
 0x10b   : > { %1483 = vmatmul.mubr.msk.f32.gmra.mrb[2].mxu0 %vm356_vm0, %v343_v9 }
 0x10e   : > { %v344_v10 = vpop.trf.xlu0 }
 0x10f   : > { %1485 = vmatprep.mubr.msk.f32.mxu0 %vm356_vm0, %v344_v10 }
 0x112   : > { %v345_v11 = vpop.trf.xlu0 }
 0x113   : > { %1486 = vmatmul.mubr.msk.f32.gmra.mrb[4].mxu0 %vm356_vm0, %v345_v11 }
 0x116   : > { %v346_v12 = vpop.trf.xlu0 }
 0x117   : > { %1488 = vmatprep.mubr.msk.f32.mxu0 %vm356_vm0, %v346_v12 }
 0x11a   : > { %v347_v13 = vpop.trf.xlu0 }
 0x11b   : > { %1489 = vmatmul.mubr.msk.f32.gmra.mrb[6].mxu0 %vm356_vm0, %v347_v13 }
 0x11e   : > { %v348_v14 = vpop.trf.xlu0 }
 0x11f   : > { %1491 = vmatprep.mubr.msk.f32.mxu0 %vm356_vm0, %v348_v14 }
 0x122   : > { %v349_v15 = vpop.trf.xlu0 }
 0x123   : > { %1492 = vmatmul.mubr.msk.f32.gmra.mrb[8].mxu0 %vm356_vm0, %v349_v15 }
 0x126   : > { %v350_v16 = vpop.trf.xlu0 }
 0x127   : > { %1494 = vmatprep.mubr.msk.f32.mxu0 %vm356_vm0, %v350_v16 }
 0x12a   : > { %v351_v17 = vpop.trf.xlu0 }
 0x12b   : > { %1495 = vmatmul.mubr.msk.f32.gmra.mrb[10].mxu0 %vm356_vm0, %v351_v17 }
 0x12e   : > { %v352_v18 = vpop.trf.xlu0 }
 0x12f   : > { %1497 = vmatprep.mubr.msk.f32.mxu0 %vm356_vm0, %v352_v18 }
 0x132   : > { %v353_v19 = vpop.trf.xlu0 }
 0x133   : > { %1498 = vmatmul.mubr.msk.f32.gmra.mrb[12].mxu0 %vm356_vm0, %v353_v19 }
 0x136   : > { %v354_v20 = vpop.trf.xlu0 }
 0x137   : > { %1500 = vmatprep.mubr.msk.f32.mxu0 %vm356_vm0, %v354_v20 }
 0x13a   : > { %v355_v21 = vpop.trf.xlu0 }
 0x13b   : > { %1501 = vmatmul.mubr.msk.f32.gmra.mrb[14].mxu0 %vm356_vm0, %v355_v21 }
 0x13e   : > { %v566_v22 = vpop.trf.xlu0 }
 0x13f   : > { %1505 = vmatprep.mubr.msk.f32.mxu1 %vm356_vm0, %v566_v22 }
 0x142   : > { %v567_v23 = vpop.trf.xlu0 }
 0x143   : > { %1506 = vmatmul.mubr.msk.f32.vlgmr.msra.gmra.mrb[0].mxu1 %vm356_vm0, %v567_v23 }
 0x146   : > { %v568_v36 = vpop.trf.xlu0 }
 0x147   : > { %1508 = vmatprep.mubr.msk.f32.mxu1 %vm356_vm0, %v568_v36 }
 0x14a   : > { %v569_v42 = vpop.trf.xlu0 }
 0x14b   : > { %1509 = vmatmul.mubr.msk.f32.gmra.mrb[2].mxu1 %vm356_vm0, %v569_v42 }
 0x14e   : > { %v570_v47 = vpop.trf.xlu0 }
 0x14f   : > { %1511 = vmatprep.mubr.msk.f32.mxu1 %vm356_vm0, %v570_v47 }
 0x152   : > { %v571_v51 = vpop.trf.xlu0 }
 0x153   : > { %1512 = vmatmul.mubr.msk.f32.gmra.mrb[4].mxu1 %vm356_vm0, %v571_v51 }
 0x156   : > { %v572_v55 = vpop.trf.xlu0 }
 0x157   : > { %1514 = vmatprep.mubr.msk.f32.mxu1 %vm356_vm0, %v572_v55 }
 0x15a   : > { %v573_v59 = vpop.trf.xlu0 }
 0x15b   : > { %1515 = vmatmul.mubr.msk.f32.gmra.mrb[6].mxu1 %vm356_vm0, %v573_v59 }
 0x15e   : > { %v574_v1 = vpop.trf.xlu0 }
 0x15f   : > { %1517 = vmatprep.mubr.msk.f32.mxu1 %vm356_vm0, %v574_v1 }
 0x162   : > { %v575_v5 = vpop.trf.xlu0 }
 0x163   : > { %1518 = vmatmul.mubr.msk.f32.gmra.mrb[8].mxu1 %vm356_vm0, %v575_v5 }
 0x166   : > { %v576_v8 = vpop.trf.xlu0 }
 0x167   : > { %1520 = vmatprep.mubr.msk.f32.mxu1 %vm356_vm0, %v576_v8 }
 0x16a   : > { %v577_v13 = vpop.trf.xlu0 }
 0x16b   : > { %1521 = vmatmul.mubr.msk.f32.gmra.mrb[10].mxu1 %vm356_vm0, %v577_v13 }
 0x16e   : > { %v578_v18 = vpop.trf.xlu0 }
 0x16f   : > { %1523 = vmatprep.mubr.msk.f32.mxu1 %vm356_vm0, %v578_v18 }
 0x172   : > { %v579_v21 = vpop.trf.xlu0 }
 0x173   : > { %1524 = vmatmul.mubr.msk.f32.gmra.mrb[12].mxu1 %vm356_vm0, %v579_v21 }
 0x1d6   : > { %v1481_v25 = vpop.f32.mrb[0].mxu0 }
 0x1d7   : > { %v841_v26 = vmax.f32 %v1481_v25, -1e+30  ;;  %v471_v27 = vpop.f32.mrb[1].mxu0 }
 0x1d8   : > { %v840_v28 = vmax.f32 %v471_v27, -1e+30 }
 0x1d9   : > { %v843_v29 = vmax.f32 %v841_v26, -1e+30 }
 0x1da   : > { %v842_v30 = vmax.f32 %v840_v28, -1e+30 }
 0x1db   : > { %v845_v31 = vmax.f32 %v843_v29, -1e+30 }
 0x1dc   : > { %v844_v32 = vmax.f32 %v842_v30, -1e+30 }
 0x1dd   : > { %v847_v33 = vmax.f32 %v845_v31, -1e+30 }
 0x1de   : > { %v846_v34 = vmax.f32 %v844_v32, -1e+30  ;;  %v1484_v35 = vpop.f32.mrb[2].mxu0 }
 0x1df   : > { %v849_v37 = vmax.f32 %v847_v33, -1e+30  ;;  %v481_v38 = vpop.f32.mrb[3].mxu0 }
 0x1e0   : > { %v848_v39 = vmax.f32 %v846_v34, -1e+30 }
 0x1e1   : > { %v851_v40 = vmax.f32 %v849_v37, -1e+30 }
 0x1e2   : > { %v850_v41 = vmax.f32 %v848_v39, -1e+30 }
 0x1e3   : > { %v853_v43 = vmax.f32 %v851_v40, -1e+30  ;;  %v1930_v40 = vmov 0.0  }
 0x1e4   : > { %v852_v44 = vmax.f32 %v850_v41, -1e+30  ;;  %1561 = vmatprep.mubr.msk.f32.mxu0 %vm1929_vm1, %v1930_v40 }
 0x1e6   : > { %v854_v45 = vmax.f32 %v852_v44, %v853_v43  ;;  %v1487_v46 = vpop.f32.mrb[4].mxu0 }
 0x1e7   : > { %v491_v48 = vpop.f32.mrb[5].mxu0 }
 0x1e8   : > { %v855_v49 = vrot.slane %v854_v45, 4 }
 0x1ea   : > { %v856_v50 = vmax.f32 %v854_v45, %v855_v49 }
 0x1ec   : > { %v857_v52 = vrot.slane %v856_v50, 2 }
 0x1ee   : > { %v858_v53 = vmax.f32 %v856_v50, %v857_v52  ;;  %v1490_v54 = vpop.f32.mrb[6].mxu0 }
 0x1ef   : > { %v501_v56 = vpop.f32.mrb[7].mxu0 }
 0x1f0   : > { %v859_v57 = vrot.slane %v858_v53, 1 }
 0x1f2   : > { %v860_v58 = vmax.f32 %v858_v53, %v859_v57 }
 0x1f4   : > { %v882_v60 = vsub.f32 %v471_v27, %v860_v58  ;;  %v883_v61 = vsub.f32 %v1481_v25, %v860_v58  ;;  %v884_v62 = vsub.f32 -1e+30, %v860_v58  ;;  %v580_v27 = vpop.trf.xlu0 }
 0x1f5   : > { %1526 = vmatprep.mubr.msk.f32.mxu1 %vm356_vm0, %v580_v27 }
 0x1f6   : > { %v914_v63 = vmul.f32 1.442695, %v882_v60  ;;  %v916_v0 = vmul.f32 1.442695, %v883_v61  ;;  %v918_v2 = vmul.f32 1.442695, %v884_v62 }
 0x1f7   : > { %v1493_v3 = vpop.f32.mrb[8].mxu0 }
 0x1f8   : > { %1727 = vpow2.f32 %v914_v63  ;;  %v511_v4 = vpop.f32.mrb[9].mxu0  ;;  %v581_v30 = vpop.trf.xlu0 }
 0x1f9   : > { %1729 = vpow2.f32 %v916_v0  ;;  %1527 = vmatmul.mubr.msk.f32.gmra.mrb[14].mxu1 %vm356_vm0, %v581_v30  ;;  %v320_v30 = vld [vmem:[%s277_s18] sm:$0xff] }
 0x1fa   : > { %1731 = vpow2.f32 %v918_v2  ;;  %1596 = vmatprep.mubr.msk.f32.mxu1 %vm1929_vm1, %v1930_v40 }
 0x1fe   : > { %v1496_v6 = vpop.f32.mrb[10].mxu0 }
 0x1ff   : > { %v521_v7 = vpop.f32.mrb[11].mxu0 }
 0x202   : > { %v2205_v9 = vpop.eup %1727 }
 0x203   : > { %v2208_v10 = vpop.eup %1729 }
 0x204   : > { %v978_v11 = vadd.f32 %v2208_v10, %v2205_v9  ;;  %v2212_v12 = vpop.eup %1731 }
 0x206   : > { %v979_v14 = vadd.f32 %v2212_v12, %v978_v11  ;;  %v1499_v15 = vpop.f32.mrb[12].mxu0 }
 0x207   : > { %v531_v16 = vpop.f32.mrb[13].mxu0 }
 0x208   : > { %v980_v17 = vadd.f32 %v2212_v12, %v979_v14 }
 0x20a   : > { %v981_v19 = vadd.f32 %v2212_v12, %v980_v17 }
 0x20c   : > { %v982_v20 = vadd.f32 %v2212_v12, %v981_v19 }
 0x20e   : > { %v983_v22 = vadd.f32 %v2212_v12, %v982_v20  ;;  %v1502_v23 = vpop.f32.mrb[14].mxu0 }
 0x20f   : > { %v541_v25 = vpop.f32.mrb[15].mxu0 }
 0x210   : > { %v984_v26 = vadd.f32 %v2212_v12, %v983_v22 }
 0x212   : > { %v985_v28 = vadd.f32 %v2212_v12, %v984_v26 }
 0x214   : > { %v986_v29 = vadd.f32 %v2212_v12, %v985_v28 }
 0x216   : > { %v987_v31 = vadd.f32 %v2212_v12, %v986_v29  ;;  %v1507_v32 = vpop.f32.mrb[0].mxu1 }
 0x217   : > { %v862_v33 = vmax.f32 %v1507_v32, -1e+30  ;;  %v696_v34 = vpop.f32.mrb[1].mxu1 }
 0x218   : > { %v988_v35 = vadd.f32 %v2212_v12, %v987_v31  ;;  %v861_v36 = vmax.f32 %v696_v34, -1e+30 }
 0x219   : > { %v864_v37 = vmax.f32 %v862_v33, -1e+30 }
 0x21a   : > { %v989_v38 = vadd.f32 %v2212_v12, %v988_v35  ;;  %v863_v39 = vmax.f32 %v861_v36, -1e+30 }
 0x21b   : > { %v866_v41 = vmax.f32 %v864_v37, -1e+30 }
 0x21c   : > { %v990_v42 = vadd.f32 %v2212_v12, %v989_v38  ;;  %v865_v43 = vmax.f32 %v863_v39, -1e+30 }
 0x21d   : > { %v868_v44 = vmax.f32 %v866_v41, -1e+30 }
 0x21e   : > { %v991_v45 = vadd.f32 %v2212_v12, %v990_v42  ;;  %v867_v46 = vmax.f32 %v865_v43, -1e+30 }
 0x21f   : > { %v870_v47 = vmax.f32 %v868_v44, -1e+30 }
 0x220   : > { %v869_v48 = vmax.f32 %v867_v46, -1e+30  ;;  %v992_v49 = vadd.f32 %v2212_v12, %v991_v45 }
 0x221   : > { %v872_v50 = vmax.f32 %v870_v47, -1e+30  ;;  %v321_v47 = vld [vmem:[%s277_s18 + $0x8] sm:$0xff] }
 0x222   : > { %v871_v51 = vmax.f32 %v869_v48, -1e+30  ;;  %v993_v52 = vrot.slane %v992_v49, 4  ;;  %v1510_v48 = vpop.f32.mrb[2].mxu1 }
 0x223   : > { %v874_v53 = vmax.f32 %v872_v50, -1e+30 }
 0x224   : > { %v873_v54 = vmax.f32 %v871_v51, -1e+30  ;;  %v994_v55 = vadd.f32 %v993_v52, %v992_v49  ;;  %v706_v49 = vpop.f32.mrb[3].mxu1 }
 0x226   : > { %v875_v56 = vmax.f32 %v873_v54, %v874_v53  ;;  %v995_v57 = vrot.slane %v994_v55, 2  ;;  %v1513_v50 = vpop.f32.mrb[4].mxu1 }
 0x227   : > { %v716_v51 = vpop.f32.mrb[5].mxu1 }
 0x228   : > { %v876_v58 = vrot.slane %v875_v56, 4  ;;  %v996_v59 = vadd.f32 %v995_v57, %v994_v55 }
 0x22a   : > { %v877_v60 = vmax.f32 %v875_v56, %v876_v58  ;;  %v997_v61 = vrot.slane %v996_v59, 1 }
 0x22c   : > { %v878_v62 = vrot.slane %v877_v60, 2  ;;  %v998_v63 = vadd.f32 %v997_v61, %v996_v59 }
 0x22e   : > { %v879_v0 = vmax.f32 %v877_v60, %v878_v62  ;;  %1733 = vrcp.f32 %v998_v63  ;;  %v1516_v52 = vpop.f32.mrb[6].mxu1 }
 0x22f   : > { %v726_v53 = vpop.f32.mrb[7].mxu1 }
 0x230   : > { %v880_v1 = vrot.slane %v879_v0, 1 }
 0x232   : > { %v881_v2 = vmax.f32 %v879_v0, %v880_v1 }
 0x234   : > { %v898_v3 = vsub.f32 %v696_v34, %v881_v2  ;;  %v899_v4 = vsub.f32 %v1507_v32, %v881_v2  ;;  %v900_v5 = vsub.f32 -1e+30, %v881_v2 }
 0x236   : > { %v946_v6 = vmul.f32 1.442695, %v898_v3  ;;  %v948_v7 = vmul.f32 1.442695, %v899_v4  ;;  %v950_v8 = vmul.f32 1.442695, %v900_v5 }
 0x237   : > { %v1519_v54 = vpop.f32.mrb[8].mxu1 }
 0x238   : > { %v1734_v11 = vpop.eup %1733  ;;  %1735 = vpow2.f32 %v946_v6  ;;  %v736_v55 = vpop.f32.mrb[9].mxu1 }
 0x239   : > { %1737 = vpow2.f32 %v948_v7  ;;  %v1022_v13 = vmul.f32 %v1734_v11, %v2205_v9  ;;  %v1023_v14 = vmul.f32 %v1734_v11, %v2208_v10  ;;  %v1024_v15 = vmul.f32 %v1734_v11, %v2212_v12 }
 0x23a   : > { %1739 = vpow2.f32 %v950_v8 }
 0x23b   : > { %v1600_v16 = vpack.c.bf16 %v1023_v14, %v1022_v13  ;;  %v1603_v17 = vpack.c.bf16 %v1024_v15, %v1024_v15 }
 0x23d   : > { %1601 = vmatpush3.bf16.msra.mxu0 %v1600_v16 }
 0x23e   : > { %1602 = vmatprep.subr.bf16.mxu0 %v1928_v24  ;;  %v1522_v56 = vpop.f32.mrb[10].mxu1 }
 0x23f   : > { %v746_v57 = vpop.f32.mrb[11].mxu1 }
 0x241   : > { %1604 = vmatpush3.bf16.msra.mxu0 %v1603_v17 }
 0x242   : > { %v1736_v18 = vpop.eup %1735  ;;  %1605 = vmatprep.subr.bf16.mxu0 %v1928_v24 }
 0x243   : > { %v1738_v19 = vpop.eup %1737 }
 0x244   : > { %v999_v20 = vadd.f32 %v1738_v19, %v1736_v18  ;;  %v1740_v21 = vpop.eup %1739 }
 0x245   : > { %1607 = vmatpush3.bf16.msra.mxu0 %v1603_v17 }
 0x246   : > { %v1000_v22 = vadd.f32 %v1740_v21, %v999_v20  ;;  %1608 = vmatprep.subr.bf16.mxu0 %v1928_v24  ;;  %v1525_v58 = vpop.f32.mrb[12].mxu1 }
 0x247   : > { %v756_v59 = vpop.f32.mrb[13].mxu1 }
 0x248   : > { %v1001_v9 = vadd.f32 %v1740_v21, %v1000_v22 }
 0x249   : > { %1610 = vmatpush3.bf16.msra.mxu0 %v1603_v17 }
 0x24a   : > { %v1002_v10 = vadd.f32 %v1740_v21, %v1001_v9  ;;  %1611 = vmatprep.subr.bf16.mxu0 %v1928_v24 }
 0x24c   : > { %v1003_v12 = vadd.f32 %v1740_v21, %v1002_v10 }
 0x24d   : > { %1613 = vmatpush3.bf16.msra.mxu0 %v1603_v17 }
 0x24e   : > { %v1004_v23 = vadd.f32 %v1740_v21, %v1003_v12  ;;  %1614 = vmatprep.subr.bf16.mxu0 %v1928_v24 }
 0x250   : > { %v1005_v25 = vadd.f32 %v1740_v21, %v1004_v23 }
 0x251   : > { %1616 = vmatpush3.bf16.msra.mxu0 %v1603_v17 }
 0x252   : > { %v1006_v26 = vadd.f32 %v1740_v21, %v1005_v25  ;;  %1617 = vmatprep.subr.bf16.mxu0 %v1928_v24 }
 0x254   : > { %v1007_v27 = vadd.f32 %v1740_v21, %v1006_v26 }
 0x255   : > { %1619 = vmatpush3.bf16.msra.mxu0 %v1603_v17 }
 0x256   : > { %v1008_v28 = vadd.f32 %v1740_v21, %v1007_v27  ;;  %1620 = vmatprep.subr.bf16.mxu0 %v1928_v24 }
 0x258   : > { %v1009_v29 = vadd.f32 %v1740_v21, %v1008_v28 }
 0x259   : > { %1622 = vmatpush3.bf16.msra.mxu0 %v1603_v17 }
 0x25a   : > { %v1010_v31 = vadd.f32 %v1740_v21, %v1009_v29 }
 0x25c   : > { %v1011_v32 = vadd.f32 %v1740_v21, %v1010_v31  ;;  %1562 = vmatmul.mubr.f32.vlgmr.msra.gmra.mrb[16].mxu0 %v320_v30 }
 0x25e   : > { %v1012_v33 = vadd.f32 %v1740_v21, %v1011_v32 }
 0x260   : > { %v1013_v34 = vadd.f32 %v1740_v21, %v1012_v33 }
 0x262   : > { %v1014_v35 = vrot.slane %v1013_v34, 4 }
 0x264   : > { %v1015_v36 = vadd.f32 %v1014_v35, %v1013_v34 }
 0x266   : > { %v1016_v37 = vrot.slane %v1015_v36, 2 }
 0x268   : > { %v1017_v38 = vadd.f32 %v1016_v37, %v1015_v36 }
 0x26a   : > { %v1018_v39 = vrot.slane %v1017_v38, 1 }
 0x26c   : > { %v1019_v40 = vadd.f32 %v1018_v39, %v1017_v38 }
 0x26e   : > { %1741 = vrcp.f32 %v1019_v40 }
 0x278   : > { %v1742_v41 = vpop.eup %1741 }
 0x279   : > { %v1038_v42 = vmul.f32 %v1742_v41, %v1736_v18  ;;  %v1039_v43 = vmul.f32 %v1742_v41, %v1738_v19  ;;  %v1040_v44 = vmul.f32 %v1742_v41, %v1740_v21 }
 0x27b   : > { %v1624_v45 = vpack.c.bf16 %v1039_v43, %v1038_v42  ;;  %v1627_v46 = vpack.c.bf16 %v1040_v44, %v1040_v44 }
 0x27d   : > { %1625 = vmatpush3.bf16.msra.mxu1 %v1624_v45 }
 0x27e   : > { %1626 = vmatprep.subr.bf16.mxu1 %v1928_v24 }
 0x281   : > { %1628 = vmatpush3.bf16.msra.mxu1 %v1627_v46 }
 0x282   : > { %1629 = vmatprep.subr.bf16.mxu1 %v1928_v24 }
 0x285   : > { %1631 = vmatpush3.bf16.msra.mxu1 %v1627_v46 }
 0x286   : > { %1632 = vmatprep.subr.bf16.mxu1 %v1928_v24 }
 0x289   : > { %1634 = vmatpush3.bf16.msra.mxu1 %v1627_v46 }
 0x28a   : > { %1635 = vmatprep.subr.bf16.mxu1 %v1928_v24 }
 0x28d   : > { %1637 = vmatpush3.bf16.msra.mxu1 %v1627_v46 }
 0x28e   : > { %1638 = vmatprep.subr.bf16.mxu1 %v1928_v24 }
 0x291   : > { %1640 = vmatpush3.bf16.msra.mxu1 %v1627_v46 }
 0x292   : > { %1641 = vmatprep.subr.bf16.mxu1 %v1928_v24 }
 0x295   : > { %1643 = vmatpush3.bf16.msra.mxu1 %v1627_v46 }
 0x296   : > { %1644 = vmatprep.subr.bf16.mxu1 %v1928_v24 }
 0x299   : > { %1646 = vmatpush3.bf16.msra.mxu1 %v1627_v46 }
 0x29c   : > { %1597 = vmatmul.mubr.f32.vlgmr.msra.gmra.mrb[16].mxu1 %v321_v47 }
 0x2cc   : > { %v1528_v24 = vpop.f32.mrb[14].mxu1 }
 0x2cd   : > { %v766_v60 = vpop.f32.mrb[15].mxu1 }
 0x32f   : > { %v1120_v61 = vpop.f32.mrb[16].mxu0 }
 0x330   : > { %1194 = vst [vmem:[%s309_s24] sm:$0xff] %v1120_v61  ;;  %v1563_v62 = vpop.f32.mrb[17].mxu0 }
 0x36f   : > { %v1190_v63 = vpop.f32.mrb[16].mxu1 }
 0x370   : > { %1195 = vst [vmem:[%s309_s24 + $0x8] sm:$0xff] %v1190_v63  ;;  %v1598_v0 = vpop.f32.mrb[17].mxu1 }
 0x371   : > { %1848 = shalt.err (!%p1845_p13)
}
 0x372   : > { %s1849_s16 = scalar_lea.hbm %s2262_s8, 256  ;;  %s1853_s22 = scalar_lea.hbm %s2314_s3, 512 }
 0x373   : > { %p1850_p11 = scmp.ne.s32.totalorder %s2262_s8, %s1849_s16  ;;  %p1854_p6 = scmp.lt.u32.totalorder %s2262_s8, %s2314_s3 }
 0x374   : > { %p1855_p3 = scmp.lt.u32.totalorder %s1853_s22, %s1849_s16  ;;  %p1857_p0 = scmp.lt.u32.totalorder %s1849_s16, %s2262_s8 }
 0x375   : > { %p1851_p5 = pnand %p1850_p11, %p2343_p7 }
 0x376   : > { %p1856_p2 = por %p1855_p3, %p1854_p6 }
 0x377   : > { %p1852_p4 = pneg %p1851_p5 }
 0x378   : > { %p1858_p8 = por %p1857_p0, %p1856_p2 }
 0x37a   : > { %p1859_p9 = pnand %p1858_p8, %p1852_p4 }
 0x37c   : > { %1862 = shalt.err (!%p1859_p9)
}
 0x37d   : > { %s1932_s19 = smov 128   ;;  %s1933_s7 = smov 8  }
 0x37e   : > { %1654 = dma.vmem_to_hbm [thread:$0]  (%p2343_p7), %s2257_s21, 256, %s2262_s8, %s1197_s28, %s1932_s19, %s1932_s19, %s1933_s7  }
 0x37f PF: > { %s1228_s20 = sand.u32 1, %s1901_s12   ;;  %p2344_p12 = scmp.ne.s32.totalorder %s2331_s27, 0 }
 0x380   : > { %p2345_p1 = scmp.ge.s32.totalorder %s1921_s17, 2  ;;  %s1229_s18 = scalar_lea.sflag [#allocation4], %s1228_s20 }
 0x382   : > { %p1667_p10 = pnand %p2345_p1, %p2344_p12 }
 0x384   : > { %1896 = dma.done.wait (!%p1667_p10), %s1229_s18, 256  }
 0x385   : > { %1898 = vsyncadd (!%p1667_p10), %s1229_s18, 4294967040  ;;  %s22_s17 = sadd.s32 1, %s1921_s17   ;;  %s2346_s15 = sld [smem:[#allocation12_spill]] }
 0x386   : > { %p19_p13 = scmp.ge.s32.totalorder %s22_s17, 4   ;;  %s2347_s16 = sld [smem:[#allocation13_spill]] }
 0x387   : > { %s2348_s12 = smov %s1905_s13  ;;  %s2349_s13 = smov %s1909_s14 }
 0x388   : > { %s2350_s14 = smov %s2014_s26  ;;  %21 = sbr.rel (!%p19_p13) target bundleno = 11 (0xb), region = 101 }
 0x38f   :  { %1234 = vsyncpa [#allocation3], 1 }
 0x390   :  { %1236 = vsyncpa [#allocation3 + $0x1], 1 }
 0x391   :  { %1237 = vsyncpa [#allocation6], 1 }
 0x392   :  { %1239 = vsyncpa [#allocation6 + $0x1], 1 }
 0x393   :  { %1240 = vsyncpa [#allocation4], 1 }
 0x394   :  { %1242 = vsyncpa [#allocation4 + $0x1], 1 }

</bundles_post_ra>
